<compile_context>
chip_gen: v5e
topology: v5e:2x2
jax: 0.10.0
libtpu: 0.0.40
codegen_flags: <defaults>
</compile_context>

<pallas_src>
import functools

import jax
import jax.numpy as jnp
import numpy as np
from jax import lax
from jax.experimental import pallas as pl
from jax.experimental.pallas import tpu as pltpu


def _skip_rnn_layer_kernel(skip_ref,   # SMEM (Tp*B,) int32   -- scalar prefetch
                           xp_ref,     # VMEM (TC, B, H)      x@W_ih^T + b_ih + b_hh
                           mask_ref,   # VMEM (TC, B, 1)
                           h0_ref,     # VMEM (B, H)
                           wp_ref,     # VMEM (H, H)          (= W_hh[:, :H]^T, h_prev half)
                           ws_ref,     # VMEM (H, H)          (= W_hh[:, H:]^T, h_skip half)
                           out_ref,    # VMEM (TC, B, H)
                           hist_ref,   # VMEM scratch (Tp+1, B, H)  hidden history
                           hskip_ref,  # VMEM scratch (B, H)        gathered skip states
                           *, batch_size, chunk):
    c = pl.program_id(0)

    @pl.when(c == 0)
    def _():
        hist_ref[0] = h0_ref[...]

    # Hoist weight loads out of the unrolled time loop.
    wp = wp_ref[...]
    ws = ws_ref[...]

    # NOTE: correctness requires strictly sequential grid execution
    # (dimension_semantics=("arbitrary",)): hist_ref carries the recurrent
    # state across time chunks.  skip_connect[t, b] must be in [0, t]; there is
    # no runtime bounds check on VMEM refs.
    for i in range(chunk):                      # chunk is small & static -> unrolled
        t = c * chunk + i
        h_prev = hist_ref[t]                    # (B, H)

        # Gather skip-connected hidden states: hskip[b] = hist[skip[t, b], b, :].
        # Per-row dynamic loads written straight into VMEM scratch (no concat).
        for b in range(batch_size):
            idx = skip_ref[t * batch_size + b]              # dynamic SMEM scalar
            hskip_ref[b:b + 1, :] = hist_ref[idx, b:b + 1, :]

        pre = (xp_ref[i]
               + jnp.dot(h_prev, wp, preferred_element_type=jnp.float32)
               + jnp.dot(hskip_ref[...], ws, preferred_element_type=jnp.float32))
        h_new = jnp.tanh(pre)

        m = mask_ref[i]                         # (B, 1) broadcasts over H
        h = h_prev + (h_new - h_prev) * m
        hist_ref[t + 1] = h                     # single (B, H) store per step

    # One contiguous slab writeback per chunk (amortized, denser store/DMA).
    out_ref[...] = hist_ref[pl.ds(c * chunk + 1, chunk)]


def _run_layer(xp, skip_flat, mask3, h0, wp, ws, *, chunk):
    Tp, B, H = xp.shape
    n_chunks = Tp // chunk
    kernel = functools.partial(_skip_rnn_layer_kernel, batch_size=B, chunk=chunk)

    # Rough VMEM budget (f32): history scratch + double-buffered xp/out blocks
    # + weight halves + small buffers.  Only raise the limit when needed.
    vmem_est = 4 * ((Tp + 1) * B * H + 4 * chunk * B * H + 2 * H * H + 4 * B * H)
    cp_kwargs = dict(dimension_semantics=("arbitrary",))   # sequential over time chunks
    if vmem_est > 24 * (1 << 20):
        cp_kwargs["vmem_limit_bytes"] = int(min(2 * vmem_est, 100 * (1 << 20)))

    out = pl.pallas_call(
        kernel,
        out_shape=jax.ShapeDtypeStruct((Tp, B, H), jnp.float32),
        grid_spec=pltpu.PrefetchScalarGridSpec(
            num_scalar_prefetch=1,
            grid=(n_chunks,),
            in_specs=[
                pl.BlockSpec((chunk, B, H), lambda c, sk: (c, 0, 0)),   # xp
                pl.BlockSpec((chunk, B, 1), lambda c, sk: (c, 0, 0)),   # mask
                pl.BlockSpec((B, H), lambda c, sk: (0, 0)),             # h0
                pl.BlockSpec((H, H), lambda c, sk: (0, 0)),             # W_hh prev half ^T
                pl.BlockSpec((H, H), lambda c, sk: (0, 0)),             # W_hh skip half ^T
            ],
            out_specs=pl.BlockSpec((chunk, B, H), lambda c, sk: (c, 0, 0)),
            scratch_shapes=[
                pltpu.VMEM((Tp + 1, B, H), jnp.float32),                # hidden history
                pltpu.VMEM((B, H), jnp.float32),                        # gathered skip rows
            ],
        ),
        compiler_params=pltpu.CompilerParams(**cp_kwargs),
    )(skip_flat, xp, mask3, h0, wp, ws)
    return out


def var_skip_rnn_forward(params, x, skip_connect, mask=None, hx=None,
                         batch_first=False, chunk=8):
    """Pallas implementation of VarSkipRNNBase.forward (tanh cell, unidirectional)."""
    if batch_first:
        x = jnp.swapaxes(x, 0, 1)
        if mask is not None:
            mask = jnp.swapaxes(mask, 0, 1)
    T, B, _ = x.shape
    H = params[0]["w_ih"].shape[0]
    L = len(params)
    if hx is None:
        hx = jnp.zeros((L, B, H), jnp.float32)
    if mask is None:
        mask3 = jnp.ones((T, B, 1), jnp.float32)
    else:
        mask3 = mask.reshape(T, B, 1).astype(jnp.float32)   # mask.view(size + (1,))

    chunk = max(1, min(chunk, T))
    n_chunks = -(-T // chunk)
    Tp = n_chunks * chunk
    pad = Tp - T

    skip = skip_connect.astype(jnp.int32)
    if pad:
        mask3 = jnp.pad(mask3, ((0, pad), (0, 0), (0, 0)))   # padded steps masked out
        skip = jnp.pad(skip, ((0, pad), (0, 0)))             # index 0 -> reads h0 (safe)
    skip_flat = skip.reshape(Tp * B)                         # flat 1D SMEM table

    hp = lax.Precision.HIGHEST
    layer_in = x.astype(jnp.float32)
    hns = []
    for l in range(L):
        p = params[l]
        Din = layer_in.shape[-1]
        # Hoisted input projection: one (T*B, Din) x (Din, H) MXU-friendly matmul.
        xp = (jnp.dot(layer_in.reshape(T * B, Din),
                      jnp.transpose(p["w_ih"]).astype(jnp.float32), precision=hp)
              + p["b_ih"] + p["b_hh"]).reshape(T, B, H)
        if pad:
            xp = jnp.pad(xp, ((0, pad), (0, 0), (0, 0)))
        wp = jnp.transpose(p["w_hh"][:, :H])    # (H, H) recurrent (h_prev) half
        ws = jnp.transpose(p["w_hh"][:, H:])    # (H, H) skip-connection half
        out_full = _run_layer(xp, skip_flat, mask3, hx[l], wp, ws, chunk=chunk)
        out = out_full[:T]
        hns.append(out[T - 1])                  # hn == h after the last real step
        layer_in = out
    output = layer_in
    hidden = jnp.stack(hns, axis=0)
    if batch_first:
        output = jnp.swapaxes(output, 0, 1)
    return output, hidden


def _reference_forward(params, x, skip_connect_np, mask, hx):
    """Pure-JAX/Python reference mirroring the PyTorch recurrence."""
    T, B, _ = x.shape
    L = len(params)
    mask3 = mask.reshape(T, B, 1)
    hp = lax.Precision.HIGHEST
    layer_in = x
    hns = []
    for l in range(L):
        p = params[l]
        h = hx[l]
        hist = [h]
        outs = []
        for t in range(T):
            hs = jnp.stack(
                [hist[int(skip_connect_np[t, b])][b] for b in range(B)], axis=0)
            pre = (jnp.dot(layer_in[t], p["w_ih"].T, precision=hp) + p["b_ih"]
                   + jnp.dot(jnp.concatenate([h, hs], axis=1), p["w_hh"].T,
                             precision=hp) + p["b_hh"])
            h_new = jnp.tanh(pre)
            h = h + (h_new - h) * mask3[t]
            hist.append(h)
            outs.append(h)
        hns.append(h)
        layer_in = jnp.stack(outs, axis=0)
    return layer_in, jnp.stack(hns, axis=0)


def _init_params(key, input_size, hidden_size, num_layers):
    """Deterministic parameter init matching VarSkipRNNCell shapes:
       weight_ih (H, layer_input), weight_hh (H, 2H), bias_ih (H,), bias_hh (H,)."""
    params = []
    for l in range(num_layers):
        layer_in = input_size if l == 0 else hidden_size
        key, k1, k2, k3, k4 = jax.random.split(key, 5)
        params.append(dict(
            w_ih=jax.random.uniform(k1, (hidden_size, layer_in), jnp.float32, -0.1, 0.1),
            w_hh=jax.random.uniform(k2, (hidden_size, 2 * hidden_size), jnp.float32, -0.1, 0.1),
            b_ih=jax.random.uniform(k3, (hidden_size,), jnp.float32, -0.1, 0.1),
            b_hh=jax.random.uniform(k4, (hidden_size,), jnp.float32, -0.1, 0.1),
        ))
    return params


if __name__ == "__main__":
    T, B, D_IN, H, L = 10, 2, 16, 32, 2   # T=10 with chunk=4 exercises multi-chunk + pad

    root = jax.random.PRNGKey(0)
    k_x, k_m, k_p, k_s = jax.random.split(root, 4)

    x = jax.random.normal(k_x, (T, B, D_IN), jnp.float32)

    # mask: mostly ones, a couple of padded (zero) steps
    mask = jnp.ones((T, B), jnp.float32)
    mask = mask.at[T - 1, 1].set(0.0).at[T - 2, 1].set(0.0)

    # skip_connect[t, b] in [0, t]: index into hidden-state history (0 == initial h0)
    skip_rows = []
    for t in range(T):
        k_s, kt = jax.random.split(k_s)
        skip_rows.append(jax.random.randint(kt, (B,), 0, t + 1, jnp.int32))
    skip_connect = jnp.stack(skip_rows, axis=0)                     # (T, B)

    params = _init_params(k_p, D_IN, H, L)
    hx = jnp.zeros((L, B, H), jnp.float32)                          # hx=None default

    out, hidden = var_skip_rnn_forward(params, x, skip_connect, mask=mask, hx=hx,
                                       chunk=4)
    out = jax.block_until_ready(out)
    hidden = jax.block_until_ready(hidden)

    ref_out, ref_hidden = _reference_forward(
        params, x, np.asarray(skip_connect), mask, hx)

    np.testing.assert_allclose(np.asarray(out), np.asarray(ref_out),
                               rtol=1e-5, atol=1e-5)
    np.testing.assert_allclose(np.asarray(hidden), np.asarray(ref_hidden),
                               rtol=1e-5, atol=1e-5)
    assert out.shape == (T, B, H) and hidden.shape == (L, B, H)

    print("KERNEL_OK")
</pallas_src>

<mosaic_0001>
module attributes {stable_mosaic.version = 11 : i64} {
  func.func @_skip_rnn_layer_kernel(%arg0: i32, %arg1: memref<24xi32, #tpu.memory_space<smem>>, %arg2: memref<4x2x32xf32, #tpu.memory_space<vmem>>, %arg3: memref<4x2x1xf32, #tpu.memory_space<vmem>>, %arg4: memref<2x32xf32, #tpu.memory_space<vmem>>, %arg5: memref<32x32xf32, #tpu.memory_space<vmem>>, %arg6: memref<32x32xf32, #tpu.memory_space<vmem>>, %arg7: memref<4x2x32xf32, #tpu.memory_space<vmem>>, %arg8: memref<13x2x32xf32, #tpu.memory_space<vmem>>, %arg9: memref<2x32xf32, #tpu.memory_space<vmem>>) attributes {dimension_semantics = [#tpu.dimension_semantics<arbitrary>], iteration_bounds = array<i64: 3>, scalar_prefetch = 1 : i64, scratch_operands = 2 : i64, tpu.core_type = #tpu.core_type<tc>, window_params = [{transform_indices = @transform_0, window_bounds = array<i64: 4, 2, 32>}, {transform_indices = @transform_1, window_bounds = array<i64: 4, 2, 1>}, {pipeline_mode = #tpu.pipeline_mode<synchronous>, transform_indices = @transform_2, window_bounds = array<i64: 2, 32>}, {pipeline_mode = #tpu.pipeline_mode<synchronous>, transform_indices = @transform_3, window_bounds = array<i64: 32, 32>}, {pipeline_mode = #tpu.pipeline_mode<synchronous>, transform_indices = @transform_4, window_bounds = array<i64: 32, 32>}, {transform_indices = @transform_5, window_bounds = array<i64: 4, 2, 32>}]} {
    %c0_i32 = arith.constant 0 : i32
    %0 = arith.cmpi eq, %arg0, %c0_i32 : i32
    %1 = arith.extui %0 : i1 to i32
    %c0_i32_0 = arith.constant 0 : i32
    %2 = arith.cmpi ne, %1, %c0_i32_0 : i32
    scf.if %2 {
      %c0_119 = arith.constant 0 : index
      %c0_120 = arith.constant 0 : index
      %170 = vector.load %arg4[%c0_119, %c0_120] : memref<2x32xf32, #tpu.memory_space<vmem>>, vector<2x32xf32>
      %c0_121 = arith.constant 0 : index
      %c0_122 = arith.constant 0 : index
      %c0_123 = arith.constant 0 : index
      %171 = vector.load %arg8[%c0_121, %c0_122, %c0_123] : memref<13x2x32xf32, #tpu.memory_space<vmem>>, vector<1x2x32xf32>
      %172 = vector.shape_cast %171 : vector<1x2x32xf32> to vector<2x32xf32>
      %173 = vector.shape_cast %170 : vector<2x32xf32> to vector<1x2x32xf32>
      tpu.vector_store %arg8[%c0_121, %c0_122, %c0_123], %173 {strides = array<i32>} : memref<13x2x32xf32, #tpu.memory_space<vmem>>, vector<1x2x32xf32>,
    } else {
    }
    %c0 = arith.constant 0 : index
    %c0_1 = arith.constant 0 : index
    %3 = vector.load %arg5[%c0, %c0_1] : memref<32x32xf32, #tpu.memory_space<vmem>>, vector<32x32xf32>
    %c0_2 = arith.constant 0 : index
    %c0_3 = arith.constant 0 : index
    %4 = vector.load %arg6[%c0_2, %c0_3] : memref<32x32xf32, #tpu.memory_space<vmem>>, vector<32x32xf32>
    %c4_i32 = arith.constant 4 : i32
    %5 = arith.muli %arg0, %c4_i32 : i32
    %c0_i32_4 = arith.constant 0 : i32
    %6 = arith.addi %5, %c0_i32_4 : i32
    %7 = arith.index_cast %6 : i32 to index
    %c0_5 = arith.constant 0 : index
    %c0_6 = arith.constant 0 : index
    %8 = vector.load %arg8[%7, %c0_5, %c0_6] : memref<13x2x32xf32, #tpu.memory_space<vmem>>, vector<1x2x32xf32>
    %9 = vector.shape_cast %8 : vector<1x2x32xf32> to vector<2x32xf32>
    %c2_i32 = arith.constant 2 : i32
    %10 = arith.muli %6, %c2_i32 : i32
    %c0_i32_7 = arith.constant 0 : i32
    %11 = arith.addi %10, %c0_i32_7 : i32
    %12 = arith.index_cast %11 : i32 to index
    %13 = memref.load %arg1[%12] : memref<24xi32, #tpu.memory_space<smem>>
    %14 = arith.index_cast %13 : i32 to index
    %c0_8 = arith.constant 0 : index
    %c0_9 = arith.constant 0 : index
    %15 = vector.load %arg8[%14, %c0_8, %c0_9] : memref<13x2x32xf32, #tpu.memory_space<vmem>>, vector<1x1x32xf32>
    %16 = vector.shape_cast %15 : vector<1x1x32xf32> to vector<1x32xf32>
    %c0_10 = arith.constant 0 : index
    %c0_11 = arith.constant 0 : index
    %17 = vector.load %arg9[%c0_10, %c0_11] : memref<2x32xf32, #tpu.memory_space<vmem>>, vector<1x32xf32>
    tpu.vector_store %arg9[%c0_10, %c0_11], %16 {strides = array<i32>} : memref<2x32xf32, #tpu.memory_space<vmem>>, vector<1x32xf32>,
    %c2_i32_12 = arith.constant 2 : i32
    %18 = arith.muli %6, %c2_i32_12 : i32
    %c1_i32 = arith.constant 1 : i32
    %19 = arith.addi %18, %c1_i32 : i32
    %20 = arith.index_cast %19 : i32 to index
    %21 = memref.load %arg1[%20] : memref<24xi32, #tpu.memory_space<smem>>
    %22 = arith.index_cast %21 : i32 to index
    %c1 = arith.constant 1 : index
    %c0_13 = arith.constant 0 : index
    %23 = vector.load %arg8[%22, %c1, %c0_13] : memref<13x2x32xf32, #tpu.memory_space<vmem>>, vector<1x1x32xf32>
    %24 = vector.shape_cast %23 : vector<1x1x32xf32> to vector<1x32xf32>
    %c1_14 = arith.constant 1 : index
    %c0_15 = arith.constant 0 : index
    %25 = vector.load %arg9[%c1_14, %c0_15] : memref<2x32xf32, #tpu.memory_space<vmem>>, vector<1x32xf32>
    tpu.vector_store %arg9[%c1_14, %c0_15], %24 {strides = array<i32>} : memref<2x32xf32, #tpu.memory_space<vmem>>, vector<1x32xf32>,
    %c0_16 = arith.constant 0 : index
    %c0_17 = arith.constant 0 : index
    %c0_18 = arith.constant 0 : index
    %26 = vector.load %arg2[%c0_16, %c0_17, %c0_18] : memref<4x2x32xf32, #tpu.memory_space<vmem>>, vector<1x2x32xf32>
    %27 = vector.shape_cast %26 : vector<1x2x32xf32> to vector<2x32xf32>
    %cst = arith.constant dense<0.000000e+00> : vector<2x32xf32>
    %28 = tpu.matmul %9, %3, %cst {dimension_numbers = #tpu.dot_dimension_numbers<[1], [0], [0], [1], [0, 0, 1, 1], [], []>} : vector<2x32xf32>, vector<32x32xf32>, vector<2x32xf32> -> vector<2x32xf32>
    %29 = arith.addf %27, %28 : vector<2x32xf32>
    %c0_19 = arith.constant 0 : index
    %c0_20 = arith.constant 0 : index
    %30 = vector.load %arg9[%c0_19, %c0_20] : memref<2x32xf32, #tpu.memory_space<vmem>>, vector<2x32xf32>
    %cst_21 = arith.constant dense<0.000000e+00> : vector<2x32xf32>
    %31 = tpu.matmul %30, %4, %cst_21 {dimension_numbers = #tpu.dot_dimension_numbers<[1], [0], [0], [1], [0, 0, 1, 1], [], []>} : vector<2x32xf32>, vector<32x32xf32>, vector<2x32xf32> -> vector<2x32xf32>
    %32 = arith.addf %29, %31 : vector<2x32xf32>
    %33 = math.tanh %32 : vector<2x32xf32>
    %c0_22 = arith.constant 0 : index
    %c0_23 = arith.constant 0 : index
    %c0_24 = arith.constant 0 : index
    %34 = vector.load %arg3[%c0_22, %c0_23, %c0_24] : memref<4x2x1xf32, #tpu.memory_space<vmem>>, vector<1x2x1xf32>
    %35 = vector.shape_cast %34 : vector<1x2x1xf32> to vector<2x1xf32>
    %36 = arith.subf %33, %9 : vector<2x32xf32>
    %37 = vector.broadcast %35 : vector<2x1xf32> to vector<2x32xf32>
    %38 = arith.mulf %36, %37 : vector<2x32xf32>
    %39 = arith.addf %9, %38 : vector<2x32xf32>
    %c1_i32_25 = arith.constant 1 : i32
    %40 = arith.addi %6, %c1_i32_25 : i32
    %41 = arith.index_cast %40 : i32 to index
    %c0_26 = arith.constant 0 : index
    %c0_27 = arith.constant 0 : index
    %42 = vector.load %arg8[%41, %c0_26, %c0_27] : memref<13x2x32xf32, #tpu.memory_space<vmem>>, vector<1x2x32xf32>
    %43 = vector.shape_cast %42 : vector<1x2x32xf32> to vector<2x32xf32>
    %44 = vector.shape_cast %39 : vector<2x32xf32> to vector<1x2x32xf32>
    tpu.vector_store %arg8[%41, %c0_26, %c0_27], %44 {strides = array<i32>} : memref<13x2x32xf32, #tpu.memory_space<vmem>>, vector<1x2x32xf32>,
    %c4_i32_28 = arith.constant 4 : i32
    %45 = arith.muli %arg0, %c4_i32_28 : i32
    %c1_i32_29 = arith.constant 1 : i32
    %46 = arith.addi %45, %c1_i32_29 : i32
    %47 = arith.index_cast %46 : i32 to index
    %c0_30 = arith.constant 0 : index
    %c0_31 = arith.constant 0 : index
    %48 = vector.load %arg8[%47, %c0_30, %c0_31] : memref<13x2x32xf32, #tpu.memory_space<vmem>>, vector<1x2x32xf32>
    %49 = vector.shape_cast %48 : vector<1x2x32xf32> to vector<2x32xf32>
    %c2_i32_32 = arith.constant 2 : i32
    %50 = arith.muli %46, %c2_i32_32 : i32
    %c0_i32_33 = arith.constant 0 : i32
    %51 = arith.addi %50, %c0_i32_33 : i32
    %52 = arith.index_cast %51 : i32 to index
    %53 = memref.load %arg1[%52] : memref<24xi32, #tpu.memory_space<smem>>
    %54 = arith.index_cast %53 : i32 to index
    %c0_34 = arith.constant 0 : index
    %c0_35 = arith.constant 0 : index
    %55 = vector.load %arg8[%54, %c0_34, %c0_35] : memref<13x2x32xf32, #tpu.memory_space<vmem>>, vector<1x1x32xf32>
    %56 = vector.shape_cast %55 : vector<1x1x32xf32> to vector<1x32xf32>
    %c0_36 = arith.constant 0 : index
    %c0_37 = arith.constant 0 : index
    %57 = vector.load %arg9[%c0_36, %c0_37] : memref<2x32xf32, #tpu.memory_space<vmem>>, vector<1x32xf32>
    tpu.vector_store %arg9[%c0_36, %c0_37], %56 {strides = array<i32>} : memref<2x32xf32, #tpu.memory_space<vmem>>, vector<1x32xf32>,
    %c2_i32_38 = arith.constant 2 : i32
    %58 = arith.muli %46, %c2_i32_38 : i32
    %c1_i32_39 = arith.constant 1 : i32
    %59 = arith.addi %58, %c1_i32_39 : i32
    %60 = arith.index_cast %59 : i32 to index
    %61 = memref.load %arg1[%60] : memref<24xi32, #tpu.memory_space<smem>>
    %62 = arith.index_cast %61 : i32 to index
    %c1_40 = arith.constant 1 : index
    %c0_41 = arith.constant 0 : index
    %63 = vector.load %arg8[%62, %c1_40, %c0_41] : memref<13x2x32xf32, #tpu.memory_space<vmem>>, vector<1x1x32xf32>
    %64 = vector.shape_cast %63 : vector<1x1x32xf32> to vector<1x32xf32>
    %c1_42 = arith.constant 1 : index
    %c0_43 = arith.constant 0 : index
    %65 = vector.load %arg9[%c1_42, %c0_43] : memref<2x32xf32, #tpu.memory_space<vmem>>, vector<1x32xf32>
    tpu.vector_store %arg9[%c1_42, %c0_43], %64 {strides = array<i32>} : memref<2x32xf32, #tpu.memory_space<vmem>>, vector<1x32xf32>,
    %c1_44 = arith.constant 1 : index
    %c0_45 = arith.constant 0 : index
    %c0_46 = arith.constant 0 : index
    %66 = vector.load %arg2[%c1_44, %c0_45, %c0_46] : memref<4x2x32xf32, #tpu.memory_space<vmem>>, vector<1x2x32xf32>
    %67 = vector.shape_cast %66 : vector<1x2x32xf32> to vector<2x32xf32>
    %cst_47 = arith.constant dense<0.000000e+00> : vector<2x32xf32>
    %68 = tpu.matmul %49, %3, %cst_47 {dimension_numbers = #tpu.dot_dimension_numbers<[1], [0], [0], [1], [0, 0, 1, 1], [], []>} : vector<2x32xf32>, vector<32x32xf32>, vector<2x32xf32> -> vector<2x32xf32>
    %69 = arith.addf %67, %68 : vector<2x32xf32>
    %c0_48 = arith.constant 0 : index
    %c0_49 = arith.constant 0 : index
    %70 = vector.load %arg9[%c0_48, %c0_49] : memref<2x32xf32, #tpu.memory_space<vmem>>, vector<2x32xf32>
    %cst_50 = arith.constant dense<0.000000e+00> : vector<2x32xf32>
    %71 = tpu.matmul %70, %4, %cst_50 {dimension_numbers = #tpu.dot_dimension_numbers<[1], [0], [0], [1], [0, 0, 1, 1], [], []>} : vector<2x32xf32>, vector<32x32xf32>, vector<2x32xf32> -> vector<2x32xf32>
    %72 = arith.addf %69, %71 : vector<2x32xf32>
    %73 = math.tanh %72 : vector<2x32xf32>
    %c1_51 = arith.constant 1 : index
    %c0_52 = arith.constant 0 : index
    %c0_53 = arith.constant 0 : index
    %74 = vector.load %arg3[%c1_51, %c0_52, %c0_53] : memref<4x2x1xf32, #tpu.memory_space<vmem>>, vector<1x2x1xf32>
    %75 = vector.shape_cast %74 : vector<1x2x1xf32> to vector<2x1xf32>
    %76 = arith.subf %73, %49 : vector<2x32xf32>
    %77 = vector.broadcast %75 : vector<2x1xf32> to vector<2x32xf32>
    %78 = arith.mulf %76, %77 : vector<2x32xf32>
    %79 = arith.addf %49, %78 : vector<2x32xf32>
    %c1_i32_54 = arith.constant 1 : i32
    %80 = arith.addi %46, %c1_i32_54 : i32
    %81 = arith.index_cast %80 : i32 to index
    %c0_55 = arith.constant 0 : index
    %c0_56 = arith.constant 0 : index
    %82 = vector.load %arg8[%81, %c0_55, %c0_56] : memref<13x2x32xf32, #tpu.memory_space<vmem>>, vector<1x2x32xf32>
    %83 = vector.shape_cast %82 : vector<1x2x32xf32> to vector<2x32xf32>
    %84 = vector.shape_cast %79 : vector<2x32xf32> to vector<1x2x32xf32>
    tpu.vector_store %arg8[%81, %c0_55, %c0_56], %84 {strides = array<i32>} : memref<13x2x32xf32, #tpu.memory_space<vmem>>, vector<1x2x32xf32>,
    %c4_i32_57 = arith.constant 4 : i32
    %85 = arith.muli %arg0, %c4_i32_57 : i32
    %c2_i32_58 = arith.constant 2 : i32
    %86 = arith.addi %85, %c2_i32_58 : i32
    %87 = arith.index_cast %86 : i32 to index
    %c0_59 = arith.constant 0 : index
    %c0_60 = arith.constant 0 : index
    %88 = vector.load %arg8[%87, %c0_59, %c0_60] : memref<13x2x32xf32, #tpu.memory_space<vmem>>, vector<1x2x32xf32>
    %89 = vector.shape_cast %88 : vector<1x2x32xf32> to vector<2x32xf32>
    %c2_i32_61 = arith.constant 2 : i32
    %90 = arith.muli %86, %c2_i32_61 : i32
    %c0_i32_62 = arith.constant 0 : i32
    %91 = arith.addi %90, %c0_i32_62 : i32
    %92 = arith.index_cast %91 : i32 to index
    %93 = memref.load %arg1[%92] : memref<24xi32, #tpu.memory_space<smem>>
    %94 = arith.index_cast %93 : i32 to index
    %c0_63 = arith.constant 0 : index
    %c0_64 = arith.constant 0 : index
    %95 = vector.load %arg8[%94, %c0_63, %c0_64] : memref<13x2x32xf32, #tpu.memory_space<vmem>>, vector<1x1x32xf32>
    %96 = vector.shape_cast %95 : vector<1x1x32xf32> to vector<1x32xf32>
    %c0_65 = arith.constant 0 : index
    %c0_66 = arith.constant 0 : index
    %97 = vector.load %arg9[%c0_65, %c0_66] : memref<2x32xf32, #tpu.memory_space<vmem>>, vector<1x32xf32>
    tpu.vector_store %arg9[%c0_65, %c0_66], %96 {strides = array<i32>} : memref<2x32xf32, #tpu.memory_space<vmem>>, vector<1x32xf32>,
    %c2_i32_67 = arith.constant 2 : i32
    %98 = arith.muli %86, %c2_i32_67 : i32
    %c1_i32_68 = arith.constant 1 : i32
    %99 = arith.addi %98, %c1_i32_68 : i32
    %100 = arith.index_cast %99 : i32 to index
    %101 = memref.load %arg1[%100] : memref<24xi32, #tpu.memory_space<smem>>
    %102 = arith.index_cast %101 : i32 to index
    %c1_69 = arith.constant 1 : index
    %c0_70 = arith.constant 0 : index
    %103 = vector.load %arg8[%102, %c1_69, %c0_70] : memref<13x2x32xf32, #tpu.memory_space<vmem>>, vector<1x1x32xf32>
    %104 = vector.shape_cast %103 : vector<1x1x32xf32> to vector<1x32xf32>
    %c1_71 = arith.constant 1 : index
    %c0_72 = arith.constant 0 : index
    %105 = vector.load %arg9[%c1_71, %c0_72] : memref<2x32xf32, #tpu.memory_space<vmem>>, vector<1x32xf32>
    tpu.vector_store %arg9[%c1_71, %c0_72], %104 {strides = array<i32>} : memref<2x32xf32, #tpu.memory_space<vmem>>, vector<1x32xf32>,
    %c2 = arith.constant 2 : index
    %c0_73 = arith.constant 0 : index
    %c0_74 = arith.constant 0 : index
    %106 = vector.load %arg2[%c2, %c0_73, %c0_74] : memref<4x2x32xf32, #tpu.memory_space<vmem>>, vector<1x2x32xf32>
    %107 = vector.shape_cast %106 : vector<1x2x32xf32> to vector<2x32xf32>
    %cst_75 = arith.constant dense<0.000000e+00> : vector<2x32xf32>
    %108 = tpu.matmul %89, %3, %cst_75 {dimension_numbers = #tpu.dot_dimension_numbers<[1], [0], [0], [1], [0, 0, 1, 1], [], []>} : vector<2x32xf32>, vector<32x32xf32>, vector<2x32xf32> -> vector<2x32xf32>
    %109 = arith.addf %107, %108 : vector<2x32xf32>
    %c0_76 = arith.constant 0 : index
    %c0_77 = arith.constant 0 : index
    %110 = vector.load %arg9[%c0_76, %c0_77] : memref<2x32xf32, #tpu.memory_space<vmem>>, vector<2x32xf32>
    %cst_78 = arith.constant dense<0.000000e+00> : vector<2x32xf32>
    %111 = tpu.matmul %110, %4, %cst_78 {dimension_numbers = #tpu.dot_dimension_numbers<[1], [0], [0], [1], [0, 0, 1, 1], [], []>} : vector<2x32xf32>, vector<32x32xf32>, vector<2x32xf32> -> vector<2x32xf32>
    %112 = arith.addf %109, %111 : vector<2x32xf32>
    %113 = math.tanh %112 : vector<2x32xf32>
    %c2_79 = arith.constant 2 : index
    %c0_80 = arith.constant 0 : index
    %c0_81 = arith.constant 0 : index
    %114 = vector.load %arg3[%c2_79, %c0_80, %c0_81] : memref<4x2x1xf32, #tpu.memory_space<vmem>>, vector<1x2x1xf32>
    %115 = vector.shape_cast %114 : vector<1x2x1xf32> to vector<2x1xf32>
    %116 = arith.subf %113, %89 : vector<2x32xf32>
    %117 = vector.broadcast %115 : vector<2x1xf32> to vector<2x32xf32>
    %118 = arith.mulf %116, %117 : vector<2x32xf32>
    %119 = arith.addf %89, %118 : vector<2x32xf32>
    %c1_i32_82 = arith.constant 1 : i32
    %120 = arith.addi %86, %c1_i32_82 : i32
    %121 = arith.index_cast %120 : i32 to index
    %c0_83 = arith.constant 0 : index
    %c0_84 = arith.constant 0 : index
    %122 = vector.load %arg8[%121, %c0_83, %c0_84] : memref<13x2x32xf32, #tpu.memory_space<vmem>>, vector<1x2x32xf32>
    %123 = vector.shape_cast %122 : vector<1x2x32xf32> to vector<2x32xf32>
    %124 = vector.shape_cast %119 : vector<2x32xf32> to vector<1x2x32xf32>
    tpu.vector_store %arg8[%121, %c0_83, %c0_84], %124 {strides = array<i32>} : memref<13x2x32xf32, #tpu.memory_space<vmem>>, vector<1x2x32xf32>,
    %c4_i32_85 = arith.constant 4 : i32
    %125 = arith.muli %arg0, %c4_i32_85 : i32
    %c3_i32 = arith.constant 3 : i32
    %126 = arith.addi %125, %c3_i32 : i32
    %127 = arith.index_cast %126 : i32 to index
    %c0_86 = arith.constant 0 : index
    %c0_87 = arith.constant 0 : index
    %128 = vector.load %arg8[%127, %c0_86, %c0_87] : memref<13x2x32xf32, #tpu.memory_space<vmem>>, vector<1x2x32xf32>
    %129 = vector.shape_cast %128 : vector<1x2x32xf32> to vector<2x32xf32>
    %c2_i32_88 = arith.constant 2 : i32
    %130 = arith.muli %126, %c2_i32_88 : i32
    %c0_i32_89 = arith.constant 0 : i32
    %131 = arith.addi %130, %c0_i32_89 : i32
    %132 = arith.index_cast %131 : i32 to index
    %133 = memref.load %arg1[%132] : memref<24xi32, #tpu.memory_space<smem>>
    %134 = arith.index_cast %133 : i32 to index
    %c0_90 = arith.constant 0 : index
    %c0_91 = arith.constant 0 : index
    %135 = vector.load %arg8[%134, %c0_90, %c0_91] : memref<13x2x32xf32, #tpu.memory_space<vmem>>, vector<1x1x32xf32>
    %136 = vector.shape_cast %135 : vector<1x1x32xf32> to vector<1x32xf32>
    %c0_92 = arith.constant 0 : index
    %c0_93 = arith.constant 0 : index
    %137 = vector.load %arg9[%c0_92, %c0_93] : memref<2x32xf32, #tpu.memory_space<vmem>>, vector<1x32xf32>
    tpu.vector_store %arg9[%c0_92, %c0_93], %136 {strides = array<i32>} : memref<2x32xf32, #tpu.memory_space<vmem>>, vector<1x32xf32>,
    %c2_i32_94 = arith.constant 2 : i32
    %138 = arith.muli %126, %c2_i32_94 : i32
    %c1_i32_95 = arith.constant 1 : i32
    %139 = arith.addi %138, %c1_i32_95 : i32
    %140 = arith.index_cast %139 : i32 to index
    %141 = memref.load %arg1[%140] : memref<24xi32, #tpu.memory_space<smem>>
    %142 = arith.index_cast %141 : i32 to index
    %c1_96 = arith.constant 1 : index
    %c0_97 = arith.constant 0 : index
    %143 = vector.load %arg8[%142, %c1_96, %c0_97] : memref<13x2x32xf32, #tpu.memory_space<vmem>>, vector<1x1x32xf32>
    %144 = vector.shape_cast %143 : vector<1x1x32xf32> to vector<1x32xf32>
    %c1_98 = arith.constant 1 : index
    %c0_99 = arith.constant 0 : index
    %145 = vector.load %arg9[%c1_98, %c0_99] : memref<2x32xf32, #tpu.memory_space<vmem>>, vector<1x32xf32>
    tpu.vector_store %arg9[%c1_98, %c0_99], %144 {strides = array<i32>} : memref<2x32xf32, #tpu.memory_space<vmem>>, vector<1x32xf32>,
    %c3 = arith.constant 3 : index
    %c0_100 = arith.constant 0 : index
    %c0_101 = arith.constant 0 : index
    %146 = vector.load %arg2[%c3, %c0_100, %c0_101] : memref<4x2x32xf32, #tpu.memory_space<vmem>>, vector<1x2x32xf32>
    %147 = vector.shape_cast %146 : vector<1x2x32xf32> to vector<2x32xf32>
    %cst_102 = arith.constant dense<0.000000e+00> : vector<2x32xf32>
    %148 = tpu.matmul %129, %3, %cst_102 {dimension_numbers = #tpu.dot_dimension_numbers<[1], [0], [0], [1], [0, 0, 1, 1], [], []>} : vector<2x32xf32>, vector<32x32xf32>, vector<2x32xf32> -> vector<2x32xf32>
    %149 = arith.addf %147, %148 : vector<2x32xf32>
    %c0_103 = arith.constant 0 : index
    %c0_104 = arith.constant 0 : index
    %150 = vector.load %arg9[%c0_103, %c0_104] : memref<2x32xf32, #tpu.memory_space<vmem>>, vector<2x32xf32>
    %cst_105 = arith.constant dense<0.000000e+00> : vector<2x32xf32>
    %151 = tpu.matmul %150, %4, %cst_105 {dimension_numbers = #tpu.dot_dimension_numbers<[1], [0], [0], [1], [0, 0, 1, 1], [], []>} : vector<2x32xf32>, vector<32x32xf32>, vector<2x32xf32> -> vector<2x32xf32>
    %152 = arith.addf %149, %151 : vector<2x32xf32>
    %153 = math.tanh %152 : vector<2x32xf32>
    %c3_106 = arith.constant 3 : index
    %c0_107 = arith.constant 0 : index
    %c0_108 = arith.constant 0 : index
    %154 = vector.load %arg3[%c3_106, %c0_107, %c0_108] : memref<4x2x1xf32, #tpu.memory_space<vmem>>, vector<1x2x1xf32>
    %155 = vector.shape_cast %154 : vector<1x2x1xf32> to vector<2x1xf32>
    %156 = arith.subf %153, %129 : vector<2x32xf32>
    %157 = vector.broadcast %155 : vector<2x1xf32> to vector<2x32xf32>
    %158 = arith.mulf %156, %157 : vector<2x32xf32>
    %159 = arith.addf %129, %158 : vector<2x32xf32>
    %c1_i32_109 = arith.constant 1 : i32
    %160 = arith.addi %126, %c1_i32_109 : i32
    %161 = arith.index_cast %160 : i32 to index
    %c0_110 = arith.constant 0 : index
    %c0_111 = arith.constant 0 : index
    %162 = vector.load %arg8[%161, %c0_110, %c0_111] : memref<13x2x32xf32, #tpu.memory_space<vmem>>, vector<1x2x32xf32>
    %163 = vector.shape_cast %162 : vector<1x2x32xf32> to vector<2x32xf32>
    %164 = vector.shape_cast %159 : vector<2x32xf32> to vector<1x2x32xf32>
    tpu.vector_store %arg8[%161, %c0_110, %c0_111], %164 {strides = array<i32>} : memref<13x2x32xf32, #tpu.memory_space<vmem>>, vector<1x2x32xf32>,
    %c4_i32_112 = arith.constant 4 : i32
    %165 = arith.muli %arg0, %c4_i32_112 : i32
    %c1_i32_113 = arith.constant 1 : i32
    %166 = arith.addi %165, %c1_i32_113 : i32
    %167 = arith.index_cast %166 : i32 to index
    %c0_114 = arith.constant 0 : index
    %c0_115 = arith.constant 0 : index
    %168 = vector.load %arg8[%167, %c0_114, %c0_115] : memref<13x2x32xf32, #tpu.memory_space<vmem>>, vector<4x2x32xf32>
    %c0_116 = arith.constant 0 : index
    %c0_117 = arith.constant 0 : index
    %c0_118 = arith.constant 0 : index
    %169 = vector.load %arg7[%c0_116, %c0_117, %c0_118] : memref<4x2x32xf32, #tpu.memory_space<vmem>>, vector<4x2x32xf32>
    tpu.vector_store %arg7[%c0_116, %c0_117, %c0_118], %168 {strides = array<i32>} : memref<4x2x32xf32, #tpu.memory_space<vmem>>, vector<4x2x32xf32>,
    return
  }
  func.func @transform_0(%arg0: i32, %arg1: memref<24xi32, #tpu.memory_space<smem>>) -> (i32, i32, i32) {
    %c0_i32 = arith.constant 0 : i32
    %c0_i32_0 = arith.constant 0 : i32
    %c0_i32_1 = arith.constant 0 : i32
    return %arg0, %c0_i32, %c0_i32_0 : i32, i32, i32
  }
  func.func @transform_1(%arg0: i32, %arg1: memref<24xi32, #tpu.memory_space<smem>>) -> (i32, i32, i32) {
    %c0_i32 = arith.constant 0 : i32
    %c0_i32_0 = arith.constant 0 : i32
    %c0_i32_1 = arith.constant 0 : i32
    return %arg0, %c0_i32, %c0_i32_0 : i32, i32, i32
  }
  func.func @transform_2(%arg0: i32, %arg1: memref<24xi32, #tpu.memory_space<smem>>) -> (i32, i32) {
    %c0_i32 = arith.constant 0 : i32
    %c0_i32_0 = arith.constant 0 : i32
    %c0_i32_1 = arith.constant 0 : i32
    return %c0_i32, %c0_i32_0 : i32, i32
  }
  func.func @transform_3(%arg0: i32, %arg1: memref<24xi32, #tpu.memory_space<smem>>) -> (i32, i32) {
    %c0_i32 = arith.constant 0 : i32
    %c0_i32_0 = arith.constant 0 : i32
    %c0_i32_1 = arith.constant 0 : i32
    return %c0_i32, %c0_i32_0 : i32, i32
  }
  func.func @transform_4(%arg0: i32, %arg1: memref<24xi32, #tpu.memory_space<smem>>) -> (i32, i32) {
    %c0_i32 = arith.constant 0 : i32
    %c0_i32_0 = arith.constant 0 : i32
    %c0_i32_1 = arith.constant 0 : i32
    return %c0_i32, %c0_i32_0 : i32, i32
  }
  func.func @transform_5(%arg0: i32, %arg1: memref<24xi32, #tpu.memory_space<smem>>) -> (i32, i32, i32) {
    %c0_i32 = arith.constant 0 : i32
    %c0_i32_0 = arith.constant 0 : i32
    %c0_i32_1 = arith.constant 0 : i32
    return %arg0, %c0_i32, %c0_i32_0 : i32, i32, i32
  }
}

</mosaic_0001>

<bundles_post_ra>
// kernel: tpu_custom_call.1
= control target key start
LH: loop header
LB: loop body
LE: loop exit
PB: predicated region body
PF: predicated region fallthrough
CT: control target
= control target key end

     0   :  { %s1080_s24 = smov [#allocation5]   ;;  %s1314_s0 = inlined_call_operand.hbm [shape: s32[24], index: 0, kind: input, shape index: {}]   ;;  %s1315_s1 = inlined_call_operand.vmem [shape: f32[12,2,32], index: 1, kind: input, shape index: {}]   ;;  %s1316_s2 = inlined_call_operand.vmem [shape: f32[12,2,1], index: 2, kind: input, shape index: {}]   ;;  %s1317_s3 = inlined_call_operand.vmem [shape: f32[2,32], index: 3, kind: input, shape index: {}]   ;;  %s1318_s4 = inlined_call_operand.hbm [shape: f32[32,32], index: 4, kind: input, shape index: {}]   ;;  %s1319_s5 = inlined_call_operand.hbm [shape: f32[32,32], index: 5, kind: input, shape index: {}]   ;;  %s1320_s6 = inlined_call_operand.hbm [shape: f32[12,2,32], index: 6, kind: output, shape index: {}]  }
   0x1   :  { %s12_s23 = sshll.u32 %s1314_s0, 4  ;;  %s13_s23 = int_to_ptr.hbm [resolvable:$true] %s12_s23 }
   0x2   :  { %15 = dma.hbm_to_smem %s13_s23, 16, %s1080_s24, [#allocation4] }
   0x3   :  { %1050 = dma.done.wait [#allocation4], 16 }
   0x4   :  { %1051 = vsyncadd [#allocation4], 4294967280 }
   0x5   :  { %18 = sfence }
   0x6   :  { %19 = vsyncpa [#allocation7], 0 }
   0x7   :  { %20 = vsyncpa [#allocation10], 0 }
   0x8   :  { %21 = vsyncpa [#allocation8], 0 }
   0x9   :  { %23 = vsyncpa [#allocation8 + $0x1], 0  ;;  %s1126_s25 = smov 0   ;;  %s1128_s26 = smov 0  }
   0xa   :  { %s1130_s27 = smov 0   ;;  %s1132_s28 = smov 0  }
   0xb LB: > { %s1147_s0 = sadd.s32 4294967295, %s1078_s28   ;;  %s777_s29 = sadd.s32 4294967294, %s1078_s28   ;;  %s1078_s28 = sphi %s1132_s28, %s1327_s28   ;;  %s1074_s27 = sphi %s1130_s27, %s1326_s27   ;;  %s1070_s26 = sphi %s1128_s26, %s1325_s26   ;;  %s1066_s25 = sphi %s1126_s25, %s1324_s25  }
   0xc   : > { %s1151_s30 = sadd.s32 1, %s1078_s28   ;;  %s151_s7 = sadd.s32 1, %s1074_s27 }
   0xd   : > { %s148_s8 = ssub.s32 %s1078_s28, %s1151_s30  ;;  %p161_p0 = scmp.ne.s32.totalorder %s1074_s27, %s1070_s26 }
   0xe   : > { %p149_p1 = scmp.eq.s32.totalorder %s148_s8, 0  ;;  %p162_p2 = scmp.eq.s32.totalorder %s1147_s0, 2 }
   0xf   : > { %p167_p3 = scmp.ne.s32.totalorder %s1070_s26, %s1066_s25  ;;  %p168_p4 = scmp.eq.s32.totalorder %s777_s29, 2 }
  0x10   : > { %s1162_s9 = scalar_select %p149_p1, %s1074_s27, %s151_s7  }
  0x11   : > { %p1164_p5 = por %p162_p2, %p161_p0  ;;  %p1168_p6 = por %p168_p4, %p167_p3 }
  0x12   : > { %p778_p7 = scmp.ge.s32.totalorder %s1078_s28, 1  ;;  %p175_p8 = scmp.lt.s32.totalorder %s1078_s28, 4 }
  0x13   : > { %p779_p9 = scmp.ne.s32.totalorder %s1147_s0, 0  ;;  %p879_p10 = scmp.eq.s32.totalorder %s1147_s0, 0 }
  0x14   : > { %p1176_p11 = pnand %p778_p7, %p175_p8  ;;  %s189_s15 = sshll.u32 %s1318_s4, 4  ;;  %s190_s15 = int_to_ptr.hbm [resolvable:$true] %s189_s15 }
  0x15   : > { %s1081_s16 = smov [#allocation6]   ;;  %s203_s20 = sshll.u32 %s1319_s5, 4  ;;  %s204_s20 = int_to_ptr.hbm [resolvable:$true] %s203_s20 }
  0x16   : > { %p868_p12 = pneg %p1176_p11  ;;  %s191_s17 = sshll.u32 %s1081_s16, 4  ;;  %s192_s17 = int_to_ptr.vmem [resolvable:$true] %s191_s17 }
  0x17   : > { %s1082_s21 = smov 128   ;;  %s1083_s22 = smov 8  }
  0x18   : > { %p869_p13 = pnand %p879_p10, %p868_p12  ;;  %s1084_s23 = smov [#allocation9]  }
  0x19   : > { %s205_s24 = sshll.u32 %s1084_s23, 4  ;;  %239 = sbr.rel (%p1176_p11) target bundleno = 700 (0x2bc), region = 40  ;;  %s206_s24 = int_to_ptr.vmem [resolvable:$true] %s205_s24 }
  0x1a   : > { %871 = dma.hbm_to_vmem [thread:$0]  (!%p869_p13), %s190_s15, 512, %s192_s17, [#allocation7], %s1082_s21, %s1082_s21, %s1083_s22  }
  0x1b   : > { %874 = dma.hbm_to_vmem [thread:$0]  (!%p869_p13), %s204_s20, 512, %s206_s24, [#allocation10], %s1082_s21, %s1082_s21, %s1083_s22  }
  0x1e   : > { %1053 = dma.done.wait (%p879_p10), [#allocation7], 512  }
  0x1f   : > { %1055 = vsyncadd (%p879_p10), [#allocation7], 4294966784 }
  0x20   : > { %1057 = dma.done.wait (%p879_p10), [#allocation10], 512  }
  0x21   : > { %1059 = vsyncadd (%p879_p10), [#allocation10], 4294966784  ;;  %s275_s29 = sand.u32 1, %s1070_s26   ;;  %s786_s7 = sshll.u32 %s1147_s0, 2 }
  0x22   : > { %s785_s8 = sshll.u32 %s275_s29, 3  ;;  %p279_p0 = scmp.lt.s32.totalorder %s786_s7, 11 }
  0x23   : > { %s1214_s19 = scalar_lea.vmem [#allocation11], %s785_s8  ;;  %294 = sbr.rel (%p779_p9) target bundleno = 42 (0x2a), region = 52 }
  0x24   : > { %s1329_s7 = smov (!%p279_p0, %s786_s7), 11 }
  0x25   : > { %s787_s12 = sshll.u32 %s1329_s7, 1 }
  0x26   : > { %s1207_s15 = scalar_lea.vmem %s1315_s1, %s787_s12  ;;  %s1212_s18 = scalar_lea.vmem %s1316_s2, %s787_s12 }
  0x28   : > { %v295_v0 = vld [vmem:[%s1317_s3] sm:$0x3]  ;;  %vm296_vm0 = vcmask 254976  }
  0x29   : > { %297 = vst.msk [vmem:[#allocation2] sm:$0x3] %vm296_vm0, %v295_v0 }
  0x2a PF: > { %v301_v1 = vld [vmem:[#allocation6 + $0x18] sm:$0xff]  ;;  %v300_v2 = vld [vmem:[#allocation6 + $0x10] sm:$0xff]  ;;  %s1222_s22 = sshll.u32 %s1147_s0, 3  ;;  %v299_v5 = vld [vmem:[#allocation6 + $0x8] sm:$0xff]  ;;  %v1085_v7 = vmov 0   ;;  %vm324_vm1 = vcmask 261120  }
  0x2b   : > { %v305_v3 = vld [vmem:[#allocation9 + $0x18] sm:$0xff]  ;;  %340 = vmatpush.msra.mxu0 %v301_v1  ;;  %v304_v4 = vld [vmem:[#allocation9 + $0x10] sm:$0xff]  ;;  %s311_s23 = sld [smem:[#allocation5 + %s1222_s22]]  ;;  %v303_v6 = vld [vmem:[#allocation9 + $0x8] sm:$0xff]  ;;  %s317_s24 = sadd.s32 1, %s1222_s22  ;;  %924 = vset.pattern.permute.xlu0 %v1085_v7  ;;  %vm315_vm2 = vcmask 253952  }
  0x2c   : > { %365 = vmatpush.msra.mxu1 %v305_v3  ;;  %418 = vmatpush.msra.mxu2 %v301_v1  ;;  %s318_s7 = sld [smem:[#allocation5 + %s317_s24]]  ;;  %v375_v8 = vld [vmem:[%s1212_s18] sm:$0x3]  ;;  %s1228_s0 = scalar_lea.vmem [#allocation2], %s1222_s22  ;;  %v808_v13 = vld [vmem:[%s1212_s18 + $0x2] sm:$0x3] }
  0x2d   : > { %341 = vmatpush.msra.mxu0 %v300_v2  ;;  %v298_v9 = vld [vmem:[#allocation6] sm:$0xff]  ;;  %379 = vperm.xlu0 %924, %v375_v8   ;;  %s845_s16 = sadd.s32 2, %s1222_s22  ;;  %vm387_vm3 = vcmask 254976   ;;  %v819_v36 = vld [vmem:[%s1212_s18 + $0x4] sm:$0x3] }
  0x2e   : > { %366 = vmatpush.msra.mxu1 %v304_v4  ;;  %v302_v10 = vld [vmem:[#allocation9] sm:$0xff]  ;;  %419 = vmatpush.msra.mxu2 %v300_v2  ;;  %s395_s17 = sadd.s32 1, %s845_s16  ;;  %s390_s20 = sld [smem:[#allocation5 + %s845_s16]]  ;;  %v830_v37 = vld [vmem:[%s1212_s18 + $0x6] sm:$0x3] }
  0x2f   : > { %342 = vmatpush.msra.mxu0 %v299_v5  ;;  %443 = vmatpush.msra.mxu3 %v305_v3  ;;  %v323_v16 = vld [vmem:[%s1207_s15] sm:$0x3]  ;;  %s396_s21 = sld [smem:[#allocation5 + %s395_s17]]  ;;  %v805_v31 = vld [vmem:[%s1207_s15 + $0x2] sm:$0x3] }
  0x30   : > { %367 = vmatpush.msra.mxu1 %v303_v6  ;;  %v309_v11 = vld [vmem:[%s1228_s0] sm:$0x3]  ;;  %420 = vmatpush.msra.mxu2 %v299_v5  ;;  %v816_v48 = vld [vmem:[%s1207_s15 + $0x4] sm:$0x3]  ;;  %v827_v63 = vld [vmem:[%s1207_s15 + $0x6] sm:$0x3] }
  0x31   : > { %343 = vmatpush.msra.mxu0 %v298_v9  ;;  %s794_s8 = sshll.u32 %s311_s23, 1  ;;  %444 = vmatpush.msra.mxu3 %v304_v4  ;;  %s644_s15 = sshll.u32 %s1214_s19, 4  ;;  %s645_s15 = int_to_ptr.vmem [resolvable:$true] %s644_s15 }
  0x32   : > { %368 = vmatpush.msra.mxu1 %v302_v10  ;;  %796 = vmatmul.msk.f32.vlgmr.msra.gmra.mxu0 %vm324_vm1, %v309_v11  ;;  %s313_s12 = scalar_lea.vmem [#allocation2], %s794_s8  ;;  %s795_s13 = sshll.u32 %s318_s7, 1 }
  0x33   : > { %421 = vmatpush.msra.mxu2 %v298_v9  ;;  %v314_v12 = vld [vmem:[%s313_s12] sm:$0x1]  ;;  %496 = vmatpush.msrb.mxu0 %v301_v1  ;;  %s320_s14 = scalar_lea.vmem [#allocation2], %s795_s13  ;;  %s848_s12 = sadd.s32 4, %s1222_s22 }
  0x34   : > { %316 = vst.msk [vmem:[#allocation3] sm:$0x1] %vm315_vm2, %v314_v12  ;;  %521 = vmatpush.msrb.mxu1 %v305_v3  ;;  %925 = vset.pattern.permute.xlu1 %v1085_v7  ;;  %v321_v14 = vld [vmem:[%s320_s14 + $0x1] sm:$0x1]  ;;  %s803_s23 = sshll.u32 %s390_s20, 1  ;;  %s473_s13 = sadd.s32 1, %s848_s12 }
  0x35   : > { %445 = vmatpush.msra.mxu3 %v303_v6  ;;  %497 = vmatpush.msrb.mxu0 %v300_v2  ;;  %322 = vst.msk [vmem:[#allocation3 + $0x1] sm:$0x1] %vm315_vm2, %v321_v14  ;;  %s804_s24 = sshll.u32 %s396_s21, 1  ;;  %s392_s7 = scalar_lea.vmem [#allocation2], %s803_s23 }
  0x36   : > { %458 = vperm.xlu0 %924, %v808_v13   ;;  %522 = vmatpush.msrb.mxu1 %v304_v4  ;;  %s398_s8 = scalar_lea.vmem [#allocation2], %s804_s24  ;;  %s468_s14 = sld [smem:[#allocation5 + %s848_s12]] }
  0x37   : > { %446 = vmatpush.msra.mxu3 %v302_v10  ;;  %498 = vmatpush.msrb.mxu0 %v299_v5  ;;  %s474_s16 = sld [smem:[#allocation5 + %s473_s13]]  ;;  %s851_s23 = sadd.s32 6, %s1222_s22 }
  0x38   : > { %523 = vmatpush.msrb.mxu1 %v303_v6  ;;  %574 = vmatpush.msrb.mxu2 %v301_v1  ;;  %s551_s24 = sadd.s32 1, %s851_s23 }
  0x39   : > { %499 = vmatpush.msrb.mxu0 %v298_v9  ;;  %599 = vmatpush.msrb.mxu3 %v305_v3 }
  0x3a   : > { %524 = vmatpush.msrb.mxu1 %v302_v10  ;;  %575 = vmatpush.msrb.mxu2 %v300_v2 }
  0x3b   : > { %600 = vmatpush.msrb.mxu3 %v304_v4  ;;  %536 = vperm.xlu1 %925, %v819_v36  }
  0x3c   : > { %576 = vmatpush.msrb.mxu2 %v299_v5  ;;  %v349_v15 = vld [vmem:[#allocation3] sm:$0x3]  ;;  %s814_s17 = sshll.u32 %s468_s14, 1 }
  0x3d   : > { %601 = vmatpush.msrb.mxu3 %v303_v6  ;;  %797 = vmatmul.msk.f32.vlgmr.msra.gmra.mxu1 %vm324_vm1, %v349_v15  ;;  %s815_s20 = sshll.u32 %s474_s16, 1  ;;  %s470_s21 = scalar_lea.vmem [#allocation2], %s814_s17 }
  0x3e   : > { %577 = vmatpush.msrb.mxu2 %v298_v9  ;;  %s476_s18 = scalar_lea.vmem [#allocation2], %s815_s20 }
  0x3f   : > { %602 = vmatpush.msrb.mxu3 %v302_v10 }
  0x43   : > { %614 = vperm.xlu1 %925, %v830_v37  }
  0x9f   : > { %v380_v23 = vpop.permute.xlu0 %379 }
  0xa8   : > { %v459_v40 = vpop.permute.xlu0 %458 }
  0xad   : > { %v537_v55 = vpop.permute.xlu1 %536 }
  0xaf   : > { %v345_v17 = vpop.f32.mrf.mxu0 }
  0xb0   : > { %v348_v18 = vadd.f32 %v345_v17, %v323_v16 }
  0xb5   : > { %v615_v6 = vpop.permute.xlu1 %614 }
  0xba   : > { %v370_v19 = vpop.f32.mrf.mxu1 }
  0xbb   : > { %v373_v20 = vadd.f32 %v370_v19, %v348_v18 }
  0xbd   : > { %926 = vtanh.f32 %v373_v20 }
  0xc3   : > { %v927_v21 = vpop.eup %926 }
  0xc4   : > { %v376_v22 = vsub.f32 %v927_v21, %v309_v11 }
  0xc6   : > { %v382_v24 = vmul.f32 %v380_v23, %v376_v22 }
  0xc8   : > { %v383_v25 = vadd.f32 %v382_v24, %v309_v11 }
  0xca   : > { %801 = vst.msk [vmem:[%s1228_s0 + $0x2] sm:$0x3] %vm387_vm3, %v383_v25 }
  0xd1   : > { %v802_v26 = vld [vmem:[%s1228_s0 + $0x2] sm:$0x3]  ;;  %v393_v27 = vld [vmem:[%s392_s7] sm:$0x1]  ;;  %v399_v28 = vld [vmem:[%s398_s8 + $0x1] sm:$0x1] }
  0xd2   : > { %806 = vmatmul.msk.f32.vlgmr.msra.gmra.mxu2 %vm324_vm1, %v802_v26  ;;  %394 = vst.msk [vmem:[#allocation3] sm:$0x1] %vm315_vm2, %v393_v27  ;;  %v834_v29 = vld [vmem:[%s1228_s0 + $0x2] sm:$0x3]  ;;  %s546_s7 = sld [smem:[#allocation5 + %s851_s23]]  ;;  %s632_s23 = scalar_lea.sflag [#allocation8], %s275_s29 }
  0xd3   : > { %400 = vst.msk [vmem:[#allocation3 + $0x1] sm:$0x1] %vm315_vm2, %v399_v28  ;;  %s552_s8 = sld [smem:[#allocation5 + %s551_s24]] }
  0xd4   : > { %627 = vst.msk [vmem:[%s1214_s19] sm:$0x3] %vm387_vm3, %v834_v29 }
  0xd8   : > { %s825_s12 = sshll.u32 %s546_s7, 1 }
  0xd9   : > { %s826_s13 = sshll.u32 %s552_s8, 1  ;;  %s548_s14 = scalar_lea.vmem [#allocation2], %s825_s12 }
  0xda   : > { %v427_v30 = vld [vmem:[#allocation3] sm:$0x3]  ;;  %s554_s16 = scalar_lea.vmem [#allocation2], %s826_s13  ;;  %s1026_s12 = scalar_lea.hbm %s1320_s6, 24 }
  0xdb   : > { %807 = vmatmul.msk.f32.vlgmr.msra.gmra.mxu3 %vm324_vm1, %v427_v30 }
 0x155   : > { %v423_v32 = vpop.f32.mrf.mxu2 }
 0x156   : > { %v426_v33 = vadd.f32 %v805_v31, %v423_v32 }
 0x15e   : > { %v448_v34 = vpop.f32.mrf.mxu3 }
 0x15f   : > { %v451_v35 = vadd.f32 %v448_v34, %v426_v33 }
 0x161   : > { %928 = vtanh.f32 %v451_v35 }
 0x167   : > { %v929_v38 = vpop.eup %928 }
 0x168   : > { %v455_v39 = vsub.f32 %v929_v38, %v802_v26 }
 0x16a   : > { %v461_v41 = vmul.f32 %v459_v40, %v455_v39 }
 0x16c   : > { %v462_v42 = vadd.f32 %v802_v26, %v461_v41 }
 0x16e   : > { %812 = vst.msk [vmem:[%s1228_s0 + $0x4] sm:$0x3] %vm387_vm3, %v462_v42 }
 0x175   : > { %v813_v43 = vld [vmem:[%s1228_s0 + $0x4] sm:$0x3]  ;;  %v471_v44 = vld [vmem:[%s470_s21] sm:$0x1]  ;;  %v477_v45 = vld [vmem:[%s476_s18 + $0x1] sm:$0x1]  ;;  %s643_s21 = scalar_lea.hbm %s1320_s6, %s1222_s22 }
 0x176   : > { %817 = vmatmul.msk.f32.vlgmr.msrb.gmra.mxu0 %vm324_vm1, %v813_v43  ;;  %472 = vst.msk [vmem:[#allocation3] sm:$0x1] %vm315_vm2, %v471_v44  ;;  %v835_v46 = vld [vmem:[%s1228_s0 + $0x4] sm:$0x3]  ;;  %s646_s18 = sshll.u32 %s643_s21, 4  ;;  %s647_s18 = int_to_ptr.hbm [resolvable:$true] %s646_s18 }
 0x177   : > { %478 = vst.msk [vmem:[#allocation3 + $0x1] sm:$0x1] %vm315_vm2, %v477_v45  ;;  %s1020_s24 = sshra.s32 %s647_s18, 4  ;;  %s1021_s24 = int_to_ptr.hbm [resolvable:$true] %s1020_s24 }
 0x178   : > { %628 = vst.msk [vmem:[%s1214_s19 + $0x2] sm:$0x3] %vm387_vm3, %v835_v46  ;;  %s1022_s7 = scalar_lea.hbm %s1021_s24, 8  ;;  %p1027_p4 = scmp.lt.s32.totalorder %s1021_s24, %s1320_s6 }
 0x179   : > { %p1023_p1 = scmp.ne.s32.totalorder %s1021_s24, %s1022_s7  ;;  %p1028_p7 = scmp.lt.s32.totalorder %s1026_s12, %s1022_s7 }
 0x17b   : > { %p1024_p2 = pnand %p1023_p1, %p1164_p5  ;;  %p1029_p8 = por %p1028_p7, %p1027_p4 }
 0x17d   : > { %p1025_p3 = pneg %p1024_p2 }
 0x17e   : > { %v505_v47 = vld [vmem:[#allocation3] sm:$0x3] }
 0x17f   : > { %818 = vmatmul.msk.f32.vlgmr.msrb.gmra.mxu1 %vm324_vm1, %v505_v47  ;;  %p1030_p9 = pnand %p1029_p8, %p1025_p3 }
 0x1f3   : > { %v501_v49 = vpop.f32.mrf.mxu0 }
 0x1f4   : > { %v504_v50 = vadd.f32 %v816_v48, %v501_v49 }
 0x1fc   : > { %v526_v51 = vpop.f32.mrf.mxu1 }
 0x1fd   : > { %v529_v52 = vadd.f32 %v526_v51, %v504_v50 }
 0x1ff   : > { %930 = vtanh.f32 %v529_v52 }
 0x205   : > { %v931_v53 = vpop.eup %930 }
 0x206   : > { %v533_v54 = vsub.f32 %v931_v53, %v813_v43 }
 0x208   : > { %v539_v56 = vmul.f32 %v537_v55, %v533_v54 }
 0x20a   : > { %v540_v57 = vadd.f32 %v813_v43, %v539_v56 }
 0x20c   : > { %823 = vst.msk [vmem:[%s1228_s0 + $0x6] sm:$0x3] %vm387_vm3, %v540_v57 }
 0x213   : > { %v824_v58 = vld [vmem:[%s1228_s0 + $0x6] sm:$0x3]  ;;  %v549_v59 = vld [vmem:[%s548_s14] sm:$0x1]  ;;  %v555_v60 = vld [vmem:[%s554_s16 + $0x1] sm:$0x1] }
 0x214   : > { %828 = vmatmul.msk.f32.vlgmr.msrb.gmra.mxu2 %vm324_vm1, %v824_v58  ;;  %550 = vst.msk [vmem:[#allocation3] sm:$0x1] %vm315_vm2, %v549_v59  ;;  %v836_v61 = vld [vmem:[%s1228_s0 + $0x6] sm:$0x3] }
 0x215   : > { %556 = vst.msk [vmem:[#allocation3 + $0x1] sm:$0x1] %vm315_vm2, %v555_v60 }
 0x216   : > { %629 = vst.msk [vmem:[%s1214_s19 + $0x4] sm:$0x3] %vm387_vm3, %v836_v61 }
 0x21c   : > { %v583_v62 = vld [vmem:[#allocation3] sm:$0x3] }
 0x21d   : > { %829 = vmatmul.msk.f32.vlgmr.msrb.gmra.mxu3 %vm324_vm1, %v583_v62 }
 0x297   : > { %v579_v0 = vpop.f32.mrf.mxu2 }
 0x298   : > { %v582_v1 = vadd.f32 %v827_v63, %v579_v0 }
 0x2a0   : > { %v604_v2 = vpop.f32.mrf.mxu3 }
 0x2a1   : > { %v607_v3 = vadd.f32 %v604_v2, %v582_v1 }
 0x2a3   : > { %932 = vtanh.f32 %v607_v3 }
 0x2a9   : > { %v933_v4 = vpop.eup %932 }
 0x2aa   : > { %v611_v5 = vsub.f32 %v933_v4, %v824_v58 }
 0x2ac   : > { %v617_v7 = vmul.f32 %v615_v6, %v611_v5 }
 0x2ae   : > { %v618_v8 = vadd.f32 %v824_v58, %v617_v7 }
 0x2b0   : > { %833 = vst.msk [vmem:[%s1228_s0 + $0x8] sm:$0x3] %vm387_vm3, %v618_v8 }
 0x2b7   : > { %v837_v9 = vld [vmem:[%s1228_s0 + $0x8] sm:$0x3] }
 0x2b8   : > { %630 = vst.msk [vmem:[%s1214_s19 + $0x6] sm:$0x3] %vm387_vm3, %v837_v9 }
 0x2b9   : > { %1033 = shalt.err (!%p1030_p9)
}
 0x2ba   : > { %s1086_s29 = smov 32   ;;  %s1087_s19 = smov 2  }
 0x2bb   : > { %866 = dma.vmem_to_hbm [thread:$0]  (%p1164_p5), %s645_s15, 128, %s647_s18, %s632_s23, %s1086_s29, %s1086_s29, %s1087_s19  }
 0x2bc PF: > { %p883_p10 = scmp.ge.s32.totalorder %s1078_s28, 2  ;;  %s661_s0 = sand.u32 1, %s1066_s25  }
 0x2bd   : > { %s662_s16 = scalar_lea.sflag [#allocation8], %s661_s0 }
 0x2be   : > { %p876_p11 = pnand %p883_p10, %p1168_p6 }
 0x2c0   : > { %p877_p12 = pneg %p876_p11 }
 0x2c2   : > { %1061 = dma.done.wait (%p877_p12), %s662_s16, 128  }
 0x2c3   : > { %1063 = vsyncadd (%p877_p12), %s662_s16, 4294967168  ;;  %p26_p13 = scmp.ge.s32.totalorder %s1151_s30, 5   ;;  %s1324_s25 = smov %s1070_s26 }
 0x2c4   : > { %s1325_s26 = smov %s1074_s27  ;;  %s1326_s27 = smov %s1162_s9 }
 0x2c5   : > { %s1327_s28 = smov %s1151_s30  ;;  %28 = sbr.rel (!%p26_p13) target bundleno = 11 (0xb), region = 110 }
 0x2ca   :  { %668 = vsyncpa [#allocation7], 1 }
 0x2cb   :  { %670 = vsyncpa [#allocation7 + $0x1], 1 }
 0x2cc   :  { %671 = vsyncpa [#allocation10], 1 }
 0x2cd   :  { %672 = vsyncpa [#allocation8], 1 }
 0x2ce   :  { %674 = vsyncpa [#allocation8 + $0x1], 1 }

</bundles_post_ra>
